<compile_context>
chip_gen: v7x
topology: tpu7x:2x2x1
jax: 0.10.0
libtpu: 0.0.40
codegen_flags: <defaults>
</compile_context>

<pallas_src>
import functools

import jax
import jax.numpy as jnp
from jax import lax
from jax.experimental import pallas as pl
from jax.experimental.pallas import tpu as pltpu

EPS = 1e-12          # matches torch.nn.functional.normalize default eps
NEG_INF = -1e30
SCORE_CLAMP = 60.0   # safety clamp for exp (scores from normalized features are O(1))


def _l2_normalize(x, axis=-1):
    # x / max(||x||, eps)  ==  x * rsqrt(max(||x||^2, eps^2))  (rsqrt -> EUP slot)
    ss = jnp.sum(x * x, axis=axis, keepdims=True)
    return x * lax.rsqrt(jnp.maximum(ss, EPS * EPS))


def _choose_tile(total, cap):
    """Rows/cells per grid step.

    Multiple of 8 (sublane rule on the output block) unless the whole batch fits in a
    single small block; for total > 16 the tile is ~total/2 (capped) so the grid has
    >= 2 steps and megacore sharding on v7x has work for both TensorCores."""
    if total <= 16:
        return total
    half = -(-total // 2)              # cdiv(total, 2)
    tile = ((half + 7) // 8) * 8       # round up to a multiple of 8 (<= total here)
    return min(cap, tile)


# ----------------------------------------------------------------------------
# Kernel 1: text path -- Linear(512, embed_dim) + row-wise L2 normalize
#           (optionally also emits L2-normalized CLIP features for the submap path)
# ----------------------------------------------------------------------------
def _text_kernel(x_ref, w_ref, b_ref, *out_refs, with_clip_norm):
    x = x_ref[...]                                                   # (TB, 512) f32
    y = jnp.dot(x.astype(jnp.bfloat16), w_ref[...],                  # bf16 MXU, f32 acc
                preferred_element_type=jnp.float32) + b_ref[...]
    out_refs[0][...] = _l2_normalize(y).astype(out_refs[0].dtype)    # (TB, D)
    if with_clip_norm:
        out_refs[1][...] = _l2_normalize(x).astype(out_refs[1].dtype)


def text_linear_normalize(clip_feats, w_bf16, b, *, return_clip_norm=False, tile_b=None):
    B, C = clip_feats.shape
    D = w_bf16.shape[1]
    tb = _choose_tile(B, 1024) if tile_b is None else min(tile_b, B)
    grid = (pl.cdiv(B, tb),)
    kernel = functools.partial(_text_kernel, with_clip_norm=return_clip_norm)

    enc_spec = pl.BlockSpec((tb, D), lambda i: (i, 0))
    if return_clip_norm:
        out_shape = (jax.ShapeDtypeStruct((B, D), jnp.float32),
                     jax.ShapeDtypeStruct((B, C), jnp.float32))
        out_specs = (enc_spec, pl.BlockSpec((tb, C), lambda i: (i, 0)))
    else:
        out_shape = jax.ShapeDtypeStruct((B, D), jnp.float32)
        out_specs = enc_spec

    extra = (4 * B * C + B) if return_clip_norm else 0
    cost = pl.CostEstimate(
        flops=int(2 * B * C * D + 8 * B * D + (4 * B * C if return_clip_norm else 0)),
        transcendentals=int(B + (B if return_clip_norm else 0)),
        bytes_accessed=int(4 * B * C + 2 * C * D + 4 * D + 4 * B * D + extra),
    )

    return pl.pallas_call(
        kernel,
        out_shape=out_shape,
        grid=grid,
        in_specs=[
            pl.BlockSpec((tb, C), lambda i: (i, 0)),      # CLIP features tile
            pl.BlockSpec((C, D), lambda i: (0, 0)),       # weight, resident (bf16)
            pl.BlockSpec((1, D), lambda i: (0, 0)),       # bias (f32)
        ],
        out_specs=out_specs,
        compiler_params=pltpu.CompilerParams(
            dimension_semantics=("parallel",),
            vmem_limit_bytes=32 * 1024 * 1024),
        cost_estimate=cost,
    )(clip_feats, w_bf16, b)


# ----------------------------------------------------------------------------
# Kernel 2: object path -- per-cell MaxPool multi-head self-attention pooling.
#
# Layout: M = TILE_B * N rows, one object per row, cells are consecutive groups of
# N (=8) rows (one sublane tile per cell).  Attention never leaves the cell: keys /
# values for relative offset r are obtained by rotating the (M, 2D) [K|V] slab
# *within each group* (two global sublane rolls + a boundary select), so only the
# N x N diagonal blocks of the attention are ever computed:
#   s_r[m, h] = sum_d q[m, h, d] * k[cell(m), (i+r) % N, h, d] + key_bias[m, r]
# accumulated over r = 0..N-1 with online exp / denominator / AV sums.
# ----------------------------------------------------------------------------
def _obj_attn_pool_kernel(x_ref, nb_ref, wqkv_ref, bqkv_ref, wo_ref, bo_ref,
                          hsum_ref, hbc_ref, o_ref):
    M, D = x_ref.shape
    N = nb_ref.shape[1]                 # objects per cell
    H = hsum_ref.shape[1]               # heads
    TB = M // N                         # cells in this block

    # F.normalize(embeddings, dim=-1), f32
    xn = _l2_normalize(x_ref[...])                                    # (M, D)

    # Fused Q|K|V projection: one MXU matmul (bf16 operands, f32 accumulation).
    # 1/sqrt(dh) is folded into Wq/bq at parameter-construction time.
    qkv = jnp.dot(xn.astype(jnp.bfloat16), wqkv_ref[...],
                  preferred_element_type=jnp.float32) + bqkv_ref[...]  # (M, 3D)
    q = qkv[:, :D]                                                     # (M, D)
    kv = qkv[:, D:]                                                    # (M, 2D) keys|values

    nb = nb_ref[...]                    # (M, N) additive key bias: 0 valid / -1e30 padded
    hsum = hsum_ref[...]                # (D, H) head-segment sum matrix
    hbc = hbc_ref[...]                  # (H, D) head broadcast matrix

    # row position inside its cell (needed for the within-group rotation select)
    i_mod = lax.broadcasted_iota(jnp.int32, (M, 1), 0) % N

    denom = jnp.zeros((M, H), jnp.float32)
    onum = jnp.zeros((M, D), jnp.float32)
    for r in range(N):
        if r == 0:
            rot = kv
        else:
            fwd = pltpu.roll(kv, shift=M - r, axis=0)    # kv[(m + r) % M]
            wrap = pltpu.roll(kv, shift=N - r, axis=0)   # kv[(m + r - N) % M]
            rot = jnp.where(i_mod < (N - r), fwd, wrap)  # stays inside the cell
        k_r = rot[:, :D]
        v_r = rot[:, D:]
        # per-head scores for key offset r: segment-sum of q*k over each head's dh lanes
        s_r = jnp.dot(q * k_r, hsum,
                      preferred_element_type=jnp.float32) + nb[:, r:r + 1]   # (M, H)
        e_r = jnp.exp(jnp.minimum(s_r, SCORE_CLAMP))                         # EUP
        denom = denom + e_r
        onum = onum + jnp.dot(e_r, hbc, preferred_element_type=jnp.float32) * v_r

    inv = pl.reciprocal(denom + 1e-20, approx=True)                    # (M, H), EUP
    attn = onum * jnp.dot(inv, hbc, preferred_element_type=jnp.float32)  # (M, D)

    # Single full-width output projection.
    attn = jnp.dot(attn.astype(jnp.bfloat16), wo_ref[...],
                   preferred_element_type=jnp.float32) + bo_ref[...]   # (M, D)

    # Masked max-pool over the objects of each cell, then F.normalize.
    qvalid = nb[:, 0:1] > -1.0          # offset-0 key of row m is row m itself
    attn = jnp.where(qvalid, attn, NEG_INF)
    pooled = jnp.max(attn.reshape(TB, N, D), axis=1)                   # (TB, D)
    o_ref[...] = _l2_normalize(pooled).astype(o_ref.dtype)


def object_attention_pool(embeddings, params, num_heads, valid_mask=None, tile_b=None):
    B, N, D = embeddings.shape
    H = num_heads
    assert D % H == 0

    emb2d = embeddings.reshape(B * N, D)            # wrapper-side (free) HBM reshape

    # Grid-invariant key-side additive bias, per (row, relative key offset):
    #   nb[b*N + i, r] = 0 if object (i+r) % N of cell b is valid else -1e30
    if valid_mask is None:
        negbias = jnp.zeros((B * N, N), jnp.float32)
    else:
        vm = valid_mask.astype(jnp.float32)
        idx = (jnp.arange(N)[:, None] + jnp.arange(N)[None, :]) % N     # (i, r) -> key
        negbias = ((vm[:, idx] - 1.0) * 1e30).reshape(B * N, N)

    tb = _choose_tile(B, 256) if tile_b is None else min(tile_b, B)
    grid = (pl.cdiv(B, tb),)

    M_total = B * N
    cost = pl.CostEstimate(
        flops=int(2 * M_total * D * 3 * D + 2 * M_total * D * D
                  + N * (4 * M_total * D * H + 4 * M_total * D)
                  + 12 * M_total * D),
        transcendentals=int(M_total * N * H + 3 * M_total + B),
        bytes_accessed=int(4 * M_total * (D + N) + 4 * B * D
                           + 2 * D * 4 * D + 4 * (4 * D + 2 * D * H)),
    )

    return pl.pallas_call(
        _obj_attn_pool_kernel,
        out_shape=jax.ShapeDtypeStruct((B, D), jnp.float32),
        grid=grid,
        in_specs=[
            pl.BlockSpec((tb * N, D), lambda i: (i, 0)),     # TILE_B cells of objects
            pl.BlockSpec((tb * N, N), lambda i: (i, 0)),     # precomputed key bias
            pl.BlockSpec((D, 3 * D), lambda i: (0, 0)),      # fused Wqkv (bf16), resident
            pl.BlockSpec((1, 3 * D), lambda i: (0, 0)),      # fused bias (f32)
            pl.BlockSpec((D, D), lambda i: (0, 0)),          # Wo (bf16)
            pl.BlockSpec((1, D), lambda i: (0, 0)),          # bo (f32)
            pl.BlockSpec((D, H), lambda i: (0, 0)),          # head-segment-sum matrix
            pl.BlockSpec((H, D), lambda i: (0, 0)),          # head-broadcast matrix
        ],
        out_specs=pl.BlockSpec((tb, D), lambda i: (i, 0)),   # (TILE_B, D) output slab
        compiler_params=pltpu.CompilerParams(
            dimension_semantics=("parallel",),
            vmem_limit_bytes=32 * 1024 * 1024),
        cost_estimate=cost,
    )(emb2d, negbias, params["wqkv"], params["bqkv"], params["wo"], params["bo"],
      params["hsum"], params["hbc"])


# ----------------------------------------------------------------------------
# Module wrapper (deterministic synthetic parameters)
# ----------------------------------------------------------------------------
class CellRetrievalNetworkPallas:
    def __init__(self, embed_dim=32, clip_dim=512, num_heads=8, key=None):
        assert embed_dim % num_heads == 0
        self.embed_dim = embed_dim
        self.clip_dim = clip_dim
        self.num_heads = num_heads
        key = jax.random.PRNGKey(42) if key is None else key
        ks = jax.random.split(key, 12)

        def lin(k, fan_in, fan_out):
            return (jax.random.normal(k, (fan_in, fan_out), jnp.float32)
                    / jnp.sqrt(jnp.float32(fan_in)))

        # language_linear / language_linear_submap : nn.Linear(512, embed_dim)
        self.lang_w = lin(ks[0], clip_dim, embed_dim).astype(jnp.bfloat16)
        self.lang_b = jax.random.normal(ks[1], (1, embed_dim), jnp.float32) * 0.01
        self.lang_w_sub = lin(ks[2], clip_dim, embed_dim).astype(jnp.bfloat16)
        self.lang_b_sub = jax.random.normal(ks[3], (1, embed_dim), jnp.float32) * 0.01

        # MaxPoolMultiHeadSelfAttention(embed_dim, num_heads=8)
        dh = embed_dim // num_heads
        scale = jnp.float32(1.0 / (dh ** 0.5))
        wq = lin(ks[4], embed_dim, embed_dim)
        wk = lin(ks[5], embed_dim, embed_dim)
        wv = lin(ks[6], embed_dim, embed_dim)
        wo = lin(ks[7], embed_dim, embed_dim)
        bq = jax.random.normal(ks[8], (1, embed_dim), jnp.float32) * 0.01
        bk = jax.random.normal(ks[9], (1, embed_dim), jnp.float32) * 0.01
        bv = jax.random.normal(ks[10], (1, embed_dim), jnp.float32) * 0.01
        bo = jax.random.normal(ks[11], (1, embed_dim), jnp.float32) * 0.01

        # Head-segment sum / broadcast matrices (grid-invariant structural constants).
        head_of_lane = jnp.arange(embed_dim) // dh
        hsum = (head_of_lane[:, None] == jnp.arange(num_heads)[None, :]).astype(jnp.float32)

        # Fold 1/sqrt(dh) into Wq/bq at construction time; fuse Q|K|V into one matrix.
        self.attn = {
            "wqkv": jnp.concatenate([wq * scale, wk, wv], axis=1).astype(jnp.bfloat16),
            "bqkv": jnp.concatenate([bq * scale, bk, bv], axis=1),
            "wo": wo.astype(jnp.bfloat16),
            "bo": bo,
            "hsum": hsum,            # (D, H)
            "hbc": hsum.T,           # (H, D)
        }

    # encode_text: CLIP features -> linear -> F.normalize
    def encode_text(self, clip_features):
        return text_linear_normalize(clip_features, self.lang_w, self.lang_b)

    # encode_text_submap: (normalized submap linear, normalized CLIP feats), fused kernel
    def encode_text_submap(self, clip_features):
        return text_linear_normalize(clip_features, self.lang_w_sub, self.lang_b_sub,
                                     return_clip_norm=True)

    # encode_objects: ObjectEncoder embeddings -> normalize -> attn max-pool -> normalize
    # valid_mask (B, N) with 1.0 for real objects handles ragged cells (padding excluded
    # from attention and from the max-pool), matching the PyTorch flattened-batch semantics.
    def encode_objects(self, object_embeddings, valid_mask=None):
        return object_attention_pool(object_embeddings, self.attn, self.num_heads,
                                     valid_mask=valid_mask)


# ----------------------------------------------------------------------------
# Plain-JAX references (mirror the bf16-weight / f32-everything-else recipe)
# ----------------------------------------------------------------------------
def _ref_text(x, w_bf16, b):
    y = jnp.dot(x.astype(jnp.bfloat16), w_bf16,
                preferred_element_type=jnp.float32) + b
    return _l2_normalize(y)


def _ref_objects(emb, p, num_heads, valid_mask=None):
    B, N, D = emb.shape
    H, dh = num_heads, D // num_heads
    if valid_mask is None:
        valid_mask = jnp.ones((B, N), jnp.float32)
    x = _l2_normalize(emb)
    qkv = (jnp.dot(x.reshape(B * N, D).astype(jnp.bfloat16), p["wqkv"],
                   preferred_element_type=jnp.float32) + p["bqkv"]).reshape(B, N, 3 * D)
    q, k, v = qkv[..., :D], qkv[..., D:2 * D], qkv[..., 2 * D:]
    qh = q.reshape(B, N, H, dh).transpose(0, 2, 1, 3)
    kh = k.reshape(B, N, H, dh).transpose(0, 2, 1, 3)
    vh = v.reshape(B, N, H, dh).transpose(0, 2, 1, 3)
    s = jnp.einsum("bhnd,bhmd->bhnm", qh, kh)                 # scale folded into Wq
    s = s + jnp.where(valid_mask[:, None, None, :] > 0.5, 0.0, NEG_INF)
    a = jax.nn.softmax(s, axis=-1)
    o = jnp.einsum("bhnm,bhmd->bhnd", a, vh)
    o = o.transpose(0, 2, 1, 3).reshape(B * N, D)
    o = (jnp.dot(o.astype(jnp.bfloat16), p["wo"],
                 preferred_element_type=jnp.float32) + p["bo"]).reshape(B, N, D)
    o = jnp.where(valid_mask[..., None] > 0.5, o, NEG_INF)
    pooled = jnp.max(o, axis=1)
    return _l2_normalize(pooled)


if __name__ == "__main__":
    B, N, D, CLIP = 2, 8, 32, 512   # cells, objects/cell, embed_dim, CLIP dim

    key = jax.random.PRNGKey(0)
    k1, k2, k3 = jax.random.split(key, 3)
    clip_feats = jax.random.normal(k1, (B, CLIP), jnp.float32)   # CLIP text output
    obj_embeds = jax.random.normal(k2, (B, N, D), jnp.float32)   # ObjectEncoder output

    net = CellRetrievalNetworkPallas(embed_dim=D, clip_dim=CLIP, num_heads=8, key=k3)

    text_enc = jax.block_until_ready(net.encode_text(clip_feats))
    sub_enc, clip_norm = net.encode_text_submap(clip_feats)
    sub_enc = jax.block_until_ready(sub_enc)
    clip_norm = jax.block_until_ready(clip_norm)
    cell_enc = jax.block_until_ready(net.encode_objects(obj_embeds))

    # ragged-cell case: cell 1 only has 5 real objects
    vmask = jnp.array([[1.0] * 8, [1.0, 1.0, 1.0, 1.0, 1.0, 0.0, 0.0, 0.0]], jnp.float32)
    cell_enc_masked = jax.block_until_ready(net.encode_objects(obj_embeds, valid_mask=vmask))

    # correctness vs. plain-JAX references (bf16 weight matmuls + approx EUP reciprocal)
    TOL = dict(atol=3e-3, rtol=3e-3)
    assert jnp.allclose(text_enc, _ref_text(clip_feats, net.lang_w, net.lang_b), **TOL)
    assert jnp.allclose(sub_enc, _ref_text(clip_feats, net.lang_w_sub, net.lang_b_sub), **TOL)
    assert jnp.allclose(clip_norm, _l2_normalize(clip_feats), **TOL)
    assert jnp.allclose(cell_enc, _ref_objects(obj_embeds, net.attn, 8), **TOL)
    assert jnp.allclose(cell_enc_masked, _ref_objects(obj_embeds, net.attn, 8, vmask), **TOL)
    assert text_enc.shape == (B, D) and cell_enc.shape == (B, D)

    print("KERNEL_OK")
</pallas_src>

<mosaic_0001>
module attributes {stable_mosaic.version = 11 : i64} {
  func.func @_text_kernel(%arg0: i32, %arg1: memref<2x512xf32, #tpu.memory_space<vmem>>, %arg2: memref<512x32xbf16, #tpu.memory_space<vmem>>, %arg3: memref<1x32xf32, #tpu.memory_space<vmem>>, %arg4: memref<2x32xf32, #tpu.memory_space<vmem>>) attributes {dimension_semantics = [#tpu.dimension_semantics<parallel>], iteration_bounds = array<i64: 1>, scalar_prefetch = 0 : i64, scratch_operands = 0 : i64, tpu.core_type = #tpu.core_type<tc>, window_params = [{transform_indices = @transform_0, window_bounds = array<i64: 2, 512>}, {pipeline_mode = #tpu.pipeline_mode<synchronous>, transform_indices = @transform_1, window_bounds = array<i64: 512, 32>}, {pipeline_mode = #tpu.pipeline_mode<synchronous>, transform_indices = @transform_2, window_bounds = array<i64: 1, 32>}, {transform_indices = @transform_3, window_bounds = array<i64: 2, 32>}]} {
    %c0 = arith.constant 0 : index
    %c0_0 = arith.constant 0 : index
    %0 = vector.load %arg1[%c0, %c0_0] : memref<2x512xf32, #tpu.memory_space<vmem>>, vector<2x512xf32>
    %1 = arith.truncf %0 : vector<2x512xf32> to vector<2x512xbf16>
    %c0_1 = arith.constant 0 : index
    %c0_2 = arith.constant 0 : index
    %2 = vector.load %arg2[%c0_1, %c0_2] : memref<512x32xbf16, #tpu.memory_space<vmem>>, vector<512x32xbf16>
    %cst = arith.constant dense<0.000000e+00> : vector<2x32xf32>
    %3 = tpu.matmul %1, %2, %cst {dimension_numbers = #tpu.dot_dimension_numbers<[1], [0], [0], [1], [0, 0, 1, 1], [], []>} : vector<2x512xbf16>, vector<512x32xbf16>, vector<2x32xf32> -> vector<2x32xf32>
    %c0_3 = arith.constant 0 : index
    %c0_4 = arith.constant 0 : index
    %4 = vector.load %arg3[%c0_3, %c0_4] : memref<1x32xf32, #tpu.memory_space<vmem>>, vector<1x32xf32>
    %5 = vector.broadcast %4 : vector<1x32xf32> to vector<2x32xf32>
    %6 = arith.addf %3, %5 : vector<2x32xf32>
    %7 = arith.mulf %6, %6 : vector<2x32xf32>
    %cst_5 = arith.constant dense<0.000000e+00> : vector<2xf32>
    %8 = vector.multi_reduction <add>, %7, %cst_5 [1] : vector<2x32xf32> to vector<2xf32>
    %9 = vector.shape_cast %8 : vector<2xf32> to vector<2x1xf32>
    %cst_6 = arith.constant 1.000000e-24 : f32
    %10 = vector.broadcast %cst_6 : f32 to vector<2x1xf32>
    %11 = arith.maximumf %9, %10 : vector<2x1xf32>
    %12 = math.rsqrt %11 : vector<2x1xf32>
    %13 = vector.broadcast %12 : vector<2x1xf32> to vector<2x32xf32>
    %14 = arith.mulf %6, %13 : vector<2x32xf32>
    %c0_7 = arith.constant 0 : index
    %c0_8 = arith.constant 0 : index
    %15 = vector.load %arg4[%c0_7, %c0_8] : memref<2x32xf32, #tpu.memory_space<vmem>>, vector<2x32xf32>
    tpu.vector_store %arg4[%c0_7, %c0_8], %14 {strides = array<i32>} : memref<2x32xf32, #tpu.memory_space<vmem>>, vector<2x32xf32>,
    return
  }
  func.func @transform_0(%arg0: i32) -> (i32, i32) {
    %c0_i32 = arith.constant 0 : i32
    %c0_i32_0 = arith.constant 0 : i32
    return %arg0, %c0_i32 : i32, i32
  }
  func.func @transform_1(%arg0: i32) -> (i32, i32) {
    %c0_i32 = arith.constant 0 : i32
    %c0_i32_0 = arith.constant 0 : i32
    %c0_i32_1 = arith.constant 0 : i32
    return %c0_i32, %c0_i32_0 : i32, i32
  }
  func.func @transform_2(%arg0: i32) -> (i32, i32) {
    %c0_i32 = arith.constant 0 : i32
    %c0_i32_0 = arith.constant 0 : i32
    %c0_i32_1 = arith.constant 0 : i32
    return %c0_i32, %c0_i32_0 : i32, i32
  }
  func.func @transform_3(%arg0: i32) -> (i32, i32) {
    %c0_i32 = arith.constant 0 : i32
    %c0_i32_0 = arith.constant 0 : i32
    return %arg0, %c0_i32 : i32, i32
  }
}

</mosaic_0001>

<bundles_post_ra>
// kernel: tpu_custom_call.1
= control target key start
LH: loop header
LB: loop body
LE: loop exit
PB: predicated region body
PF: predicated region fallthrough
CT: control target
= control target key end

     0   :  { %v22_v30 = vlaneseq  ;;  %s683_s0 = inlined_call_operand.vmem [shape: f32[2,512], index: 0, kind: input, shape index: {}]   ;;  %s684_s1 = inlined_call_operand.vmem [shape: bf16[512,32], index: 1, kind: input, shape index: {}]   ;;  %s685_s2 = inlined_call_operand.vmem [shape: f32[1,32], index: 2, kind: input, shape index: {}]   ;;  %s686_s3 = inlined_call_operand.hbm [shape: f32[2,32], index: 3, kind: output, shape index: {}]  }
   0x1   :  { %v488_v0 = vld [vmem:[%s684_s1 + $0x40] sm:$0xff]   ;;  %v492_v4 = vld [vmem:[%s684_s1 + $0x48] sm:$0xff]   ;;  %v496_v8 = vld [vmem:[%s684_s1 + $0x50] sm:$0xff]  }
   0x2   :  { %v489_v1 = vld [vmem:[%s684_s1 + $0xc0] sm:$0xff]   ;;  %442 = vmatprep.subr.bf16.mxu0 %v488_v0  ;;  %v493_v5 = vld [vmem:[%s684_s1 + $0xc8] sm:$0xff]   ;;  %v497_v9 = vld [vmem:[%s684_s1 + $0xd0] sm:$0xff]  }
   0x3   :  { %v490_v2 = vld [vmem:[%s684_s1] sm:$0xff]   ;;  %464 = vmatprep.subr.bf16.mxu1 %v489_v1  ;;  %v494_v6 = vld [vmem:[%s684_s1 + $0x8] sm:$0xff]   ;;  %v498_v10 = vld [vmem:[%s684_s1 + $0x10] sm:$0xff]  }
   0x4   :  { %v491_v3 = vld [vmem:[%s684_s1 + $0x80] sm:$0xff]   ;;  %443 = vmatpush3.bf16.msra.mxu0 %v490_v2  ;;  %v495_v7 = vld [vmem:[%s684_s1 + $0x88] sm:$0xff]   ;;  %v499_v11 = vld [vmem:[%s684_s1 + $0x90] sm:$0xff]  }
   0x5   :  { %465 = vmatpush3.bf16.msra.mxu1 %v491_v3  ;;  %444 = vmatprep.subr.bf16.mxu0 %v492_v4  ;;  %v500_v12 = vld [vmem:[%s684_s1 + $0x58] sm:$0xff]   ;;  %v504_v16 = vld [vmem:[%s684_s1 + $0x60] sm:$0xff]   ;;  %v508_v20 = vld [vmem:[%s684_s1 + $0x68] sm:$0xff]  }
   0x6   :  { %466 = vmatprep.subr.bf16.mxu1 %v493_v5  ;;  %v501_v13 = vld [vmem:[%s684_s1 + $0xd8] sm:$0xff]   ;;  %v505_v17 = vld [vmem:[%s684_s1 + $0xe0] sm:$0xff]   ;;  %v509_v21 = vld [vmem:[%s684_s1 + $0xe8] sm:$0xff]  }
   0x7   :  { %v502_v14 = vld [vmem:[%s684_s1 + $0x18] sm:$0xff]   ;;  %v506_v18 = vld [vmem:[%s684_s1 + $0x20] sm:$0xff]   ;;  %v510_v22 = vld [vmem:[%s684_s1 + $0x28] sm:$0xff]  }
   0x8   :  { %445 = vmatpush3.bf16.msra.mxu0 %v494_v6  ;;  %v503_v15 = vld [vmem:[%s684_s1 + $0x98] sm:$0xff]   ;;  %v507_v19 = vld [vmem:[%s684_s1 + $0xa0] sm:$0xff]   ;;  %v511_v23 = vld [vmem:[%s684_s1 + $0xa8] sm:$0xff]  }
   0x9   :  { %467 = vmatpush3.bf16.msra.mxu1 %v495_v7  ;;  %446 = vmatprep.subr.bf16.mxu0 %v496_v8  ;;  %v512_v24 = vld [vmem:[%s684_s1 + $0x70] sm:$0xff]   ;;  %v516_v28 = vld [vmem:[%s684_s1 + $0x78] sm:$0xff]   ;;  %v16_v33 = vld [vmem:[%s683_s0] sm:$0xff] }
   0xa   :  { %468 = vmatprep.subr.bf16.mxu1 %v497_v9  ;;  %v513_v25 = vld [vmem:[%s684_s1 + $0xf0] sm:$0xff]   ;;  %v517_v29 = vld [vmem:[%s684_s1 + $0xf8] sm:$0xff]  }
   0xb   :  { %v514_v26 = vld [vmem:[%s684_s1 + $0x30] sm:$0xff]   ;;  %v518_v31 = vld [vmem:[%s684_s1 + $0x38] sm:$0xff]  }
   0xc   :  { %447 = vmatpush3.bf16.msra.mxu0 %v498_v10  ;;  %v515_v27 = vld [vmem:[%s684_s1 + $0xb0] sm:$0xff]   ;;  %v519_v32 = vld [vmem:[%s684_s1 + $0xb8] sm:$0xff]  }
   0xd   :  { %469 = vmatpush3.bf16.msra.mxu1 %v499_v11  ;;  %448 = vmatprep.subr.bf16.mxu0 %v500_v12 }
   0xe   :  { %470 = vmatprep.subr.bf16.mxu1 %v501_v13 }
  0x10   :  { %449 = vmatpush3.bf16.msra.mxu0 %v502_v14 }
  0x11   :  { %471 = vmatpush3.bf16.msra.mxu1 %v503_v15  ;;  %450 = vmatprep.subr.bf16.mxu0 %v504_v16 }
  0x12   :  { %472 = vmatprep.subr.bf16.mxu1 %v505_v17 }
  0x14   :  { %451 = vmatpush3.bf16.msra.mxu0 %v506_v18 }
  0x15   :  { %473 = vmatpush3.bf16.msra.mxu1 %v507_v19  ;;  %452 = vmatprep.subr.bf16.mxu0 %v508_v20 }
  0x16   :  { %474 = vmatprep.subr.bf16.mxu1 %v509_v21 }
  0x18   :  { %453 = vmatpush3.bf16.msra.mxu0 %v510_v22 }
  0x19   :  { %475 = vmatpush3.bf16.msra.mxu1 %v511_v23  ;;  %454 = vmatprep.subr.bf16.mxu0 %v512_v24 }
  0x1a   :  { %476 = vmatprep.subr.bf16.mxu1 %v513_v25 }
  0x1c   :  { %455 = vmatpush3.bf16.msra.mxu0 %v514_v26 }
  0x1d   :  { %477 = vmatpush3.bf16.msra.mxu1 %v515_v27  ;;  %456 = vmatprep.subr.bf16.mxu0 %v516_v28 }
  0x1e   :  { %478 = vmatprep.subr.bf16.mxu1 %v517_v29 }
  0x20   :  { %457 = vmatpush3.bf16.msra.mxu0 %v518_v31 }
  0x21   :  { %8 = vsyncpa [#allocation3], 0  ;;  %479 = vmatpush3.bf16.msra.mxu1 %v519_v32  ;;  %v547_v34 = vmov 1983009808   ;;  %v23_v36 = vshrl.u32 %v22_v30, 7  ;;  %v18_v38 = vcombine.high %v16_v33, %v16_v33  ;;  %vm387_vm0 = vcmask 254976  }
  0x22   :  { %v20_v35 = vunpack.c.l.s4 %v547_v34  ;;  %v409_v50 = vld [vmem:[%s685_s2] ss:$0 sm:$0xff]  ;;  %s548_s24 = smov [#allocation2]  }
  0x23   :  { %s401_s25 = sshll.u32 %s548_s24, 4  ;;  %s402_s25 = int_to_ptr.vmem [resolvable:$true] %s401_s25 }
  0x24   :  { %v21_v37 = vunpack.c.0.s8 %v20_v35  ;;  %s523_s2 = scalar_lea.vmem %s402_s25, 32  ;;  %p528_p1 = scmp.lt.s32.totalorder %s402_s25, %s402_s25 }
  0x25   :  { %p524_p0 = scmp.ne.s32.totalorder %s402_s25, %s523_s2  ;;  %p529_p2 = scmp.lt.s32.totalorder %s523_s2, %s523_s2 }
  0x26   :  { %v24_v39 = vsub.s32 %v21_v37, %v23_v36 }
  0x27   :  { %p530_p3 = por %p529_p2, %p528_p1 }
  0x28   :  { %v25_v40 = vrot.slane %v16_v33, %v24_v39  ;;  %v32_v41 = vrot.slane %v18_v38, %v24_v39 }
  0x29   :  { %p531_p4 = pnand %p530_p3, %p524_p0 }
  0x2a   :  { %v33_v42 = vcombine.high %v25_v40, %v25_v40  ;;  %v34_v43 = vcombine.high %v32_v41, %v32_v41  ;;  %v39_v44 = vpack.c.bf16 %v25_v40, %v25_v40  ;;  %v41_v45 = vpack.c.bf16 %v32_v41, %v32_v41 }
  0x2c   :  { %v40_v46 = vpack.c.bf16 %v33_v42, %v33_v42  ;;  %v42_v47 = vpack.c.bf16 %v34_v43, %v34_v43 }
  0x2e   :  { %338 = vmatprep.mubr.bf16.mxu0 %v40_v46  ;;  %378 = vmatprep.mubr.bf16.mxu1 %v42_v47 }
  0x2f   :  { %339 = vmatmul.mubr.bf16.vlgmr.msra.gmra.mrb[0].mxu0 %v39_v44  ;;  %379 = vmatmul.mubr.bf16.vlgmr.msra.gmra.mrb[0].mxu1 %v41_v45 }
 0x102   :  { %v458_v48 = vpop.f32.mrb[0].mxu0  ;;  %v480_v49 = vpop.f32.mrb[0].mxu1 }
 0x103   :  { %v459_v51 = vpop.f32.mrb[1].mxu0  ;;  %v481_v52 = vpop.f32.mrb[1].mxu1 }
 0x104   :  { %v460_v53 = vadd.f32 %v459_v51, %v458_v48  ;;  %v482_v54 = vadd.f32 %v481_v52, %v480_v49  ;;  %v461_v55 = vpop.f32.mrb[2].mxu0  ;;  %v483_v56 = vpop.f32.mrb[2].mxu1 }
 0x105   :  { %v462_v57 = vpop.f32.mrb[3].mxu0  ;;  %v484_v58 = vpop.f32.mrb[3].mxu1 }
 0x106   :  { %v341_v59 = vadd.f32 %v460_v53, %v409_v50 }
 0x108   :  { %v381_v60 = vadd.f32 %v482_v54, %v341_v59 }
 0x10a   :  { %v386_v61 = vmul.f32 %v381_v60, %v381_v60 }
 0x10c   :  { %v388_v62 = vsel %vm387_vm0, %v386_v61, 0.0 }
 0x10d   :  { %389 = vadd.xlane.f32.xlu0 %v388_v62 }
 0x19a   :  { %v390_v63 = vpop.xlane.xlu0 %389 }
 0x19b   :  { %v391_v0 = vmax.f32 %v390_v63, 1e-24 }
 0x19d   :  { %521 = vrsqrt.f32 %v391_v0 }
 0x1a7   :  { %v522_v1 = vpop.eup %521 }
 0x1a8   :  { %v393_v2 = vmul.f32 %v522_v1, %v381_v60 }
 0x1aa   :  { %394 = vst.msk [vmem:[#allocation2] sm:$0x3] %vm387_vm0, %v393_v2 }
 0x1ab   :  { %534 = shalt.err (!%p531_p4)
}
 0x1ac   :  { %s535_s28 = scalar_lea.hbm %s686_s3, 32 }
 0x1ad   :  { %p536_p5 = scmp.ne.s32.totalorder %s686_s3, %s535_s28  ;;  %p539_p6 = scmp.lt.u32.totalorder %s535_s28, %s686_s3 }
 0x1af   :  { %p541_p7 = pnand %p539_p6, %p536_p5 }
 0x1b1   :  { %544 = shalt.err (!%p541_p7)
}
 0x1b2   :  { %404 = dma.vmem_to_hbm [thread:$0]  %s402_s25, 32, %s686_s3, [#allocation3]  }
 0x1b3   :  { %545 = dma.done.wait [#allocation3], 32  }
 0x1b4   :  { %546 = vsyncadd [#allocation3], 4294967264 }
 0x1b5   :  { %408 = vsyncpa [#allocation3], 1 }

</bundles_post_ra>
